<compile_context>
chip_gen: v6e
topology: v6e:2x2x1
jax: 0.10.0
libtpu: 0.0.40
codegen_flags: <defaults>
</compile_context>

<pallas_src>
import string

import jax
import jax.numpy as jnp
from jax import lax
from jax.experimental import pallas as pl
from jax.experimental.pallas import tpu as pltpu

all_letters = string.ascii_letters + ",.; '"

CHAR_DIM = len(all_letters)              # 57
HIDDEN_DIM = 128
COMBINATION_DIM = CHAR_DIM + HIDDEN_DIM  # 185
# Source script has `language_to_names = {}` -> a degenerate 0-class head; we use a
# small positive class count so the kernel is meaningful.
LANGUAGE_DIM = 18

# Packed / padded layout used by the fused kernel.
CHAR_LANE = 128    # one-hot input lanes: 57 -> 128 (clean MXU K, aligned rows)
LANG_PAD = 128     # logits head lanes:   18 -> 128 (lane-dense stores)
N_PAD = 256        # merged head width: lanes [0:18] logits, [128:256] hidden
NEG_INF = -1e30    # "minus infinity" bias for dead logit lanes


def pack_params(w_out, b_out, w_hid, b_hid):
    """Merge + pad the two Linear heads into the fused-kernel weight layout.

    Merged output (lane) axis, width N_PAD=256:
      [0:LANGUAGE_DIM]     logits head (w_out)
      [LANGUAGE_DIM:128]   dead lanes (bias = -1e30 so log-softmax ignores them)
      [128:256]            hidden head (w_hid)
    Combination (row) axis split:
      rows [0:CHAR_DIM]    per-character weight table (one-hot rows, padded to 128)
      rows [CHAR_DIM:185]  hidden-to-(logits|hidden) matrix -> clean K=128 matmul
    """
    w_full = jnp.zeros((COMBINATION_DIM, N_PAD), jnp.float32)
    w_full = w_full.at[:, :LANGUAGE_DIM].set(w_out.T)
    w_full = w_full.at[:, LANG_PAD:].set(w_hid.T)

    w_char = jnp.zeros((CHAR_LANE, N_PAD), jnp.float32)        # dense 2-D table
    w_char = w_char.at[:CHAR_DIM, :].set(w_full[:CHAR_DIM])
    w_hid_part = w_full[CHAR_DIM:]                              # (128, 256)

    bias = jnp.full((1, N_PAD), NEG_INF, jnp.float32)
    bias = bias.at[0, :LANGUAGE_DIM].set(b_out)
    bias = bias.at[0, LANG_PAD:].set(b_hid)
    return w_char, w_hid_part, bias


def rnn_forward_batched(char_idx, hidden0, w_char, w_hid_part, bias):
    """Fused multi-step, multi-sequence RNN forward.

    char_idx: (B, T) int32 character indices (the module's one-hot inputs).
    hidden0:  (B, HIDDEN_DIM) initial hidden rows (RNN._zero_hidden, transposed).
    Returns (log_probs (B, T, LANGUAGE_DIM), final_hidden (B, HIDDEN_DIM)).
    """
    batch, seq_len = char_idx.shape
    b_pad = max(8, ((batch + 7) // 8) * 8)      # sublane-aligned batch
    tb = seq_len * b_pad                        # flat (time-major) row count

    # Flat time-major layouts: row r = t * b_pad + b.  Pad-batch rows get index -1
    # (-> all-zero one-hot); their outputs are garbage-but-finite and sliced away.
    idx_tb = jnp.full((seq_len, b_pad), -1, jnp.int32)
    idx_tb = idx_tb.at[:, :batch].set(char_idx.T.astype(jnp.int32))
    idx_flat = idx_tb.reshape(tb, 1)
    h0_pad = jnp.zeros((b_pad, HIDDEN_DIM), jnp.float32).at[:batch].set(hidden0)

    def kernel(idx_ref, w_char_ref, w_hid_ref, bias_ref, h0_ref,
               out_ref, h_out_ref, ctx_ref):
        # ---- hoisted: char-weight + bias contribution for ALL timesteps --------
        # Independent of the hidden state, so it runs as one big MXU matmul
        # before the serial recurrence (one-hot never touches HBM).
        idx = idx_ref[...]                                              # (tb, 1)
        lanes = lax.broadcasted_iota(jnp.int32, (tb, CHAR_LANE), 1)
        onehot = (lanes == idx).astype(jnp.float32)                     # (tb, 128)
        ctx_ref[...] = (
            jnp.dot(onehot, w_char_ref[...], preferred_element_type=jnp.float32)
            + bias_ref[...])                                            # (tb, 256)

        # ---- serial recurrence: one (b_pad,128)@(128,256) matmul per step ------
        def step(t, h):
            base = pl.multiple_of(t * b_pad, b_pad)
            y = ctx_ref[pl.ds(base, b_pad), :] + jnp.dot(
                h, w_hid_ref[...], preferred_element_type=jnp.float32)  # (b_pad,256)

            # log-softmax over the 128 logit lanes; lanes >= LANGUAGE_DIM carry a
            # -1e30 bias so exp() underflows to exactly 0 and never perturbs the
            # result.  Store is sublane/lane-dense (unmasked vst) into the slab.
            logits = y[:, :LANG_PAD]
            m = jnp.max(logits, axis=-1, keepdims=True)
            shifted = logits - m
            lse = jnp.log(jnp.sum(jnp.exp(shifted), axis=-1, keepdims=True))
            out_ref[pl.ds(base, b_pad), :] = shifted - lse

            return y[:, LANG_PAD:]                                      # new hidden

        h_final = lax.fori_loop(0, seq_len, step, h0_ref[...],
                                unroll=seq_len <= 32)
        h_out_ref[...] = h_final

    grid_spec = pltpu.PrefetchScalarGridSpec(
        num_scalar_prefetch=0,
        grid=(1,),                                   # whole problem in one call
        in_specs=[
            pl.BlockSpec((tb, 1), lambda i: (0, 0)),
            pl.BlockSpec((CHAR_LANE, N_PAD), lambda i: (0, 0)),
            pl.BlockSpec((HIDDEN_DIM, N_PAD), lambda i: (0, 0)),
            pl.BlockSpec((1, N_PAD), lambda i: (0, 0)),
            pl.BlockSpec((b_pad, HIDDEN_DIM), lambda i: (0, 0)),
        ],
        out_specs=(
            pl.BlockSpec((tb, LANG_PAD), lambda i: (0, 0)),
            pl.BlockSpec((b_pad, HIDDEN_DIM), lambda i: (0, 0)),
        ),
        scratch_shapes=[pltpu.VMEM((tb, N_PAD), jnp.float32)],
    )

    out_flat, h_final = pl.pallas_call(
        kernel,
        grid_spec=grid_spec,
        out_shape=(
            jax.ShapeDtypeStruct((tb, LANG_PAD), jnp.float32),
            jax.ShapeDtypeStruct((b_pad, HIDDEN_DIM), jnp.float32),
        ),
        input_output_aliases={4: 1},                 # hidden0 buffer -> final hidden
        compiler_params=pltpu.CompilerParams(
            dimension_semantics=("arbitrary",)),
    )(idx_flat, w_char, w_hid_part, bias, h0_pad)

    log_probs = out_flat.reshape(seq_len, b_pad, LANG_PAD)[:, :batch, :LANGUAGE_DIM]
    return jnp.transpose(log_probs, (1, 0, 2)), h_final[:batch]


def init_params(key):
    """Deterministic parameters mimicking nn.Linear's U(-1/sqrt(fan_in), +) init."""
    k1, k2, k3, k4 = jax.random.split(key, 4)
    bound = 1.0 / jnp.sqrt(jnp.float32(COMBINATION_DIM))
    w_out = jax.random.uniform(k1, (LANGUAGE_DIM, COMBINATION_DIM),
                               jnp.float32, -bound, bound)
    b_out = jax.random.uniform(k2, (LANGUAGE_DIM,), jnp.float32, -bound, bound)
    w_hid = jax.random.uniform(k3, (HIDDEN_DIM, COMBINATION_DIM),
                               jnp.float32, -bound, bound)
    b_hid = jax.random.uniform(k4, (HIDDEN_DIM,), jnp.float32, -bound, bound)
    return w_out, b_out, w_hid, b_hid


if __name__ == "__main__":
    key = jax.random.PRNGKey(0)
    k_params, k_seq = jax.random.split(key)
    w_out, b_out, w_hid, b_hid = init_params(k_params)

    BATCH, SEQ_LEN = 2, 8
    char_idx = jax.random.randint(k_seq, (BATCH, SEQ_LEN), 0, CHAR_DIM,
                                  dtype=jnp.int32)
    hidden0 = jnp.zeros((BATCH, HIDDEN_DIM), jnp.float32)   # RNN._zero_hidden

    w_char, w_hid_part, bias = pack_params(w_out, b_out, w_hid, b_hid)
    log_probs, h_final = jax.jit(rnn_forward_batched)(
        char_idx, hidden0, w_char, w_hid_part, bias)
    jax.block_until_ready((log_probs, h_final))

    # Pure-JAX reference: per-step loop with the original module's semantics,
    # run independently for each sequence in the batch.
    def ref_sequence(idx_seq):
        def ref_step(h, idx):
            x = jax.nn.one_hot(idx, CHAR_DIM, dtype=jnp.float32)[:, None]   # (57, 1)
            comb = jnp.concatenate([x, h], axis=0).T                         # (1, 185)
            logits = comb @ w_out.T + b_out[None, :]
            lp = logits - jax.scipy.special.logsumexp(logits, axis=-1,
                                                      keepdims=True)
            new_h = (comb @ w_hid.T + b_hid[None, :]).T
            return new_h, lp[0]
        h_fin, lps = jax.lax.scan(ref_step,
                                  jnp.zeros((HIDDEN_DIM, 1), jnp.float32),
                                  idx_seq)
        return lps, h_fin[:, 0]

    lp_ref, h_ref = jax.vmap(ref_sequence)(char_idx)

    assert log_probs.shape == (BATCH, SEQ_LEN, LANGUAGE_DIM)
    assert h_final.shape == (BATCH, HIDDEN_DIM)
    assert jnp.allclose(log_probs, lp_ref, atol=1e-4, rtol=1e-4)
    assert jnp.allclose(h_final, h_ref, atol=1e-4, rtol=1e-4)

    print("KERNEL_OK")
</pallas_src>

<mosaic_0001>
module attributes {stable_mosaic.version = 11 : i64} {
  func.func @kernel(%arg0: i32, %arg1: memref<64x1xi32, #tpu.memory_space<vmem>>, %arg2: memref<128x256xf32, #tpu.memory_space<vmem>>, %arg3: memref<128x256xf32, #tpu.memory_space<vmem>>, %arg4: memref<1x256xf32, #tpu.memory_space<vmem>>, %arg5: memref<8x128xf32, #tpu.memory_space<vmem>>, %arg6: memref<64x128xf32, #tpu.memory_space<vmem>>, %arg7: memref<8x128xf32, #tpu.memory_space<vmem>>, %arg8: memref<64x256xf32, #tpu.memory_space<vmem>>) attributes {dimension_semantics = [#tpu.dimension_semantics<arbitrary>], iteration_bounds = array<i64: 1>, scalar_prefetch = 0 : i64, scratch_operands = 1 : i64, tpu.core_type = #tpu.core_type<tc>, window_params = [{pipeline_mode = #tpu.pipeline_mode<synchronous>, transform_indices = @transform_0, window_bounds = array<i64: 64, 1>}, {pipeline_mode = #tpu.pipeline_mode<synchronous>, transform_indices = @transform_1, window_bounds = array<i64: 128, 256>}, {pipeline_mode = #tpu.pipeline_mode<synchronous>, transform_indices = @transform_2, window_bounds = array<i64: 128, 256>}, {pipeline_mode = #tpu.pipeline_mode<synchronous>, transform_indices = @transform_3, window_bounds = array<i64: 1, 256>}, {pipeline_mode = #tpu.pipeline_mode<synchronous>, transform_indices = @transform_4, window_bounds = array<i64: 8, 128>}, {pipeline_mode = #tpu.pipeline_mode<synchronous>, transform_indices = @transform_5, window_bounds = array<i64: 64, 128>}, {pipeline_mode = #tpu.pipeline_mode<synchronous>, transform_indices = @transform_6, window_bounds = array<i64: 8, 128>}]} {
    %c0 = arith.constant 0 : index
    %c0_0 = arith.constant 0 : index
    %0 = vector.load %arg1[%c0, %c0_0] : memref<64x1xi32, #tpu.memory_space<vmem>>, vector<64x1xi32>
    %1 = tpu.iota {dimensions = array<i32: 1>} : vector<64x128xi32>
    %2 = vector.broadcast %0 : vector<64x1xi32> to vector<64x128xi32>
    %3 = arith.cmpi eq, %1, %2 : vector<64x128xi32>
    %4 = arith.extui %3 : vector<64x128xi1> to vector<64x128xi32>
    %5 = arith.sitofp %4 : vector<64x128xi32> to vector<64x128xf32>
    %c0_1 = arith.constant 0 : index
    %c0_2 = arith.constant 0 : index
    %6 = vector.load %arg2[%c0_1, %c0_2] : memref<128x256xf32, #tpu.memory_space<vmem>>, vector<128x256xf32>
    %cst = arith.constant dense<0.000000e+00> : vector<64x256xf32>
    %7 = tpu.matmul %5, %6, %cst {dimension_numbers = #tpu.dot_dimension_numbers<[1], [0], [0], [1], [0, 0, 1, 1], [], []>} : vector<64x128xf32>, vector<128x256xf32>, vector<64x256xf32> -> vector<64x256xf32>
    %c0_3 = arith.constant 0 : index
    %c0_4 = arith.constant 0 : index
    %8 = vector.load %arg4[%c0_3, %c0_4] : memref<1x256xf32, #tpu.memory_space<vmem>>, vector<1x256xf32>
    %9 = vector.broadcast %8 : vector<1x256xf32> to vector<64x256xf32>
    %10 = arith.addf %7, %9 : vector<64x256xf32>
    %c0_5 = arith.constant 0 : index
    %c0_6 = arith.constant 0 : index
    %11 = vector.load %arg8[%c0_5, %c0_6] : memref<64x256xf32, #tpu.memory_space<vmem>>, vector<64x256xf32>
    tpu.vector_store %arg8[%c0_5, %c0_6], %10 {strides = array<i32>} : memref<64x256xf32, #tpu.memory_space<vmem>>, vector<64x256xf32>,
    %c0_7 = arith.constant 0 : index
    %c0_8 = arith.constant 0 : index
    %12 = vector.load %arg5[%c0_7, %c0_8] : memref<8x128xf32, #tpu.memory_space<vmem>>, vector<8x128xf32>
    %c0_i32 = arith.constant 0 : i32
    %c8_i32 = arith.constant 8 : i32
    %13 = arith.muli %c0_i32, %c8_i32 : i32
    %14 = tpu.assume_multiple %13, 8 : i32
    %15 = arith.index_cast %14 : i32 to index
    %c0_9 = arith.constant 0 : index
    %16 = vector.load %arg8[%15, %c0_9] : memref<64x256xf32, #tpu.memory_space<vmem>>, vector<8x256xf32>
    %c0_10 = arith.constant 0 : index
    %c0_11 = arith.constant 0 : index
    %17 = vector.load %arg3[%c0_10, %c0_11] : memref<128x256xf32, #tpu.memory_space<vmem>>, vector<128x256xf32>
    %cst_12 = arith.constant dense<0.000000e+00> : vector<8x256xf32>
    %18 = tpu.matmul %12, %17, %cst_12 {dimension_numbers = #tpu.dot_dimension_numbers<[1], [0], [0], [1], [0, 0, 1, 1], [], []>} : vector<8x128xf32>, vector<128x256xf32>, vector<8x256xf32> -> vector<8x256xf32>
    %19 = arith.addf %16, %18 : vector<8x256xf32>
    %20 = vector.extract_strided_slice %19 {offsets = [0, 0], sizes = [8, 128], strides = [1, 1]} : vector<8x256xf32> to vector<8x128xf32>
    %cst_13 = arith.constant dense<0xFF800000> : vector<8xf32>
    %21 = vector.multi_reduction <maximumf>, %20, %cst_13 [1] : vector<8x128xf32> to vector<8xf32>
    %22 = vector.shape_cast %21 : vector<8xf32> to vector<8x1xf32>
    %23 = vector.broadcast %22 : vector<8x1xf32> to vector<8x128xf32>
    %24 = arith.subf %20, %23 : vector<8x128xf32>
    %25 = math.exp %24 : vector<8x128xf32>
    %cst_14 = arith.constant dense<0.000000e+00> : vector<8xf32>
    %26 = vector.multi_reduction <add>, %25, %cst_14 [1] : vector<8x128xf32> to vector<8xf32>
    %27 = vector.shape_cast %26 : vector<8xf32> to vector<8x1xf32>
    %28 = math.log %27 : vector<8x1xf32>
    %29 = vector.broadcast %28 : vector<8x1xf32> to vector<8x128xf32>
    %30 = arith.subf %24, %29 : vector<8x128xf32>
    %31 = arith.index_cast %14 : i32 to index
    %c0_15 = arith.constant 0 : index
    %32 = vector.load %arg6[%31, %c0_15] : memref<64x128xf32, #tpu.memory_space<vmem>>, vector<8x128xf32>
    tpu.vector_store %arg6[%31, %c0_15], %30 {strides = array<i32>} : memref<64x128xf32, #tpu.memory_space<vmem>>, vector<8x128xf32>,
    %33 = vector.extract_strided_slice %19 {offsets = [0, 128], sizes = [8, 128], strides = [1, 1]} : vector<8x256xf32> to vector<8x128xf32>
    %c1_i32 = arith.constant 1 : i32
    %c8_i32_16 = arith.constant 8 : i32
    %34 = arith.muli %c1_i32, %c8_i32_16 : i32
    %35 = tpu.assume_multiple %34, 8 : i32
    %36 = arith.index_cast %35 : i32 to index
    %c0_17 = arith.constant 0 : index
    %37 = vector.load %arg8[%36, %c0_17] : memref<64x256xf32, #tpu.memory_space<vmem>>, vector<8x256xf32>
    %c0_18 = arith.constant 0 : index
    %c0_19 = arith.constant 0 : index
    %38 = vector.load %arg3[%c0_18, %c0_19] : memref<128x256xf32, #tpu.memory_space<vmem>>, vector<128x256xf32>
    %cst_20 = arith.constant dense<0.000000e+00> : vector<8x256xf32>
    %39 = tpu.matmul %33, %38, %cst_20 {dimension_numbers = #tpu.dot_dimension_numbers<[1], [0], [0], [1], [0, 0, 1, 1], [], []>} : vector<8x128xf32>, vector<128x256xf32>, vector<8x256xf32> -> vector<8x256xf32>
    %40 = arith.addf %37, %39 : vector<8x256xf32>
    %41 = vector.extract_strided_slice %40 {offsets = [0, 0], sizes = [8, 128], strides = [1, 1]} : vector<8x256xf32> to vector<8x128xf32>
    %cst_21 = arith.constant dense<0xFF800000> : vector<8xf32>
    %42 = vector.multi_reduction <maximumf>, %41, %cst_21 [1] : vector<8x128xf32> to vector<8xf32>
    %43 = vector.shape_cast %42 : vector<8xf32> to vector<8x1xf32>
    %44 = vector.broadcast %43 : vector<8x1xf32> to vector<8x128xf32>
    %45 = arith.subf %41, %44 : vector<8x128xf32>
    %46 = math.exp %45 : vector<8x128xf32>
    %cst_22 = arith.constant dense<0.000000e+00> : vector<8xf32>
    %47 = vector.multi_reduction <add>, %46, %cst_22 [1] : vector<8x128xf32> to vector<8xf32>
    %48 = vector.shape_cast %47 : vector<8xf32> to vector<8x1xf32>
    %49 = math.log %48 : vector<8x1xf32>
    %50 = vector.broadcast %49 : vector<8x1xf32> to vector<8x128xf32>
    %51 = arith.subf %45, %50 : vector<8x128xf32>
    %52 = arith.index_cast %35 : i32 to index
    %c0_23 = arith.constant 0 : index
    %53 = vector.load %arg6[%52, %c0_23] : memref<64x128xf32, #tpu.memory_space<vmem>>, vector<8x128xf32>
    tpu.vector_store %arg6[%52, %c0_23], %51 {strides = array<i32>} : memref<64x128xf32, #tpu.memory_space<vmem>>, vector<8x128xf32>,
    %54 = vector.extract_strided_slice %40 {offsets = [0, 128], sizes = [8, 128], strides = [1, 1]} : vector<8x256xf32> to vector<8x128xf32>
    %c2_i32 = arith.constant 2 : i32
    %c8_i32_24 = arith.constant 8 : i32
    %55 = arith.muli %c2_i32, %c8_i32_24 : i32
    %56 = tpu.assume_multiple %55, 8 : i32
    %57 = arith.index_cast %56 : i32 to index
    %c0_25 = arith.constant 0 : index
    %58 = vector.load %arg8[%57, %c0_25] : memref<64x256xf32, #tpu.memory_space<vmem>>, vector<8x256xf32>
    %c0_26 = arith.constant 0 : index
    %c0_27 = arith.constant 0 : index
    %59 = vector.load %arg3[%c0_26, %c0_27] : memref<128x256xf32, #tpu.memory_space<vmem>>, vector<128x256xf32>
    %cst_28 = arith.constant dense<0.000000e+00> : vector<8x256xf32>
    %60 = tpu.matmul %54, %59, %cst_28 {dimension_numbers = #tpu.dot_dimension_numbers<[1], [0], [0], [1], [0, 0, 1, 1], [], []>} : vector<8x128xf32>, vector<128x256xf32>, vector<8x256xf32> -> vector<8x256xf32>
    %61 = arith.addf %58, %60 : vector<8x256xf32>
    %62 = vector.extract_strided_slice %61 {offsets = [0, 0], sizes = [8, 128], strides = [1, 1]} : vector<8x256xf32> to vector<8x128xf32>
    %cst_29 = arith.constant dense<0xFF800000> : vector<8xf32>
    %63 = vector.multi_reduction <maximumf>, %62, %cst_29 [1] : vector<8x128xf32> to vector<8xf32>
    %64 = vector.shape_cast %63 : vector<8xf32> to vector<8x1xf32>
    %65 = vector.broadcast %64 : vector<8x1xf32> to vector<8x128xf32>
    %66 = arith.subf %62, %65 : vector<8x128xf32>
    %67 = math.exp %66 : vector<8x128xf32>
    %cst_30 = arith.constant dense<0.000000e+00> : vector<8xf32>
    %68 = vector.multi_reduction <add>, %67, %cst_30 [1] : vector<8x128xf32> to vector<8xf32>
    %69 = vector.shape_cast %68 : vector<8xf32> to vector<8x1xf32>
    %70 = math.log %69 : vector<8x1xf32>
    %71 = vector.broadcast %70 : vector<8x1xf32> to vector<8x128xf32>
    %72 = arith.subf %66, %71 : vector<8x128xf32>
    %73 = arith.index_cast %56 : i32 to index
    %c0_31 = arith.constant 0 : index
    %74 = vector.load %arg6[%73, %c0_31] : memref<64x128xf32, #tpu.memory_space<vmem>>, vector<8x128xf32>
    tpu.vector_store %arg6[%73, %c0_31], %72 {strides = array<i32>} : memref<64x128xf32, #tpu.memory_space<vmem>>, vector<8x128xf32>,
    %75 = vector.extract_strided_slice %61 {offsets = [0, 128], sizes = [8, 128], strides = [1, 1]} : vector<8x256xf32> to vector<8x128xf32>
    %c3_i32 = arith.constant 3 : i32
    %c8_i32_32 = arith.constant 8 : i32
    %76 = arith.muli %c3_i32, %c8_i32_32 : i32
    %77 = tpu.assume_multiple %76, 8 : i32
    %78 = arith.index_cast %77 : i32 to index
    %c0_33 = arith.constant 0 : index
    %79 = vector.load %arg8[%78, %c0_33] : memref<64x256xf32, #tpu.memory_space<vmem>>, vector<8x256xf32>
    %c0_34 = arith.constant 0 : index
    %c0_35 = arith.constant 0 : index
    %80 = vector.load %arg3[%c0_34, %c0_35] : memref<128x256xf32, #tpu.memory_space<vmem>>, vector<128x256xf32>
    %cst_36 = arith.constant dense<0.000000e+00> : vector<8x256xf32>
    %81 = tpu.matmul %75, %80, %cst_36 {dimension_numbers = #tpu.dot_dimension_numbers<[1], [0], [0], [1], [0, 0, 1, 1], [], []>} : vector<8x128xf32>, vector<128x256xf32>, vector<8x256xf32> -> vector<8x256xf32>
    %82 = arith.addf %79, %81 : vector<8x256xf32>
    %83 = vector.extract_strided_slice %82 {offsets = [0, 0], sizes = [8, 128], strides = [1, 1]} : vector<8x256xf32> to vector<8x128xf32>
    %cst_37 = arith.constant dense<0xFF800000> : vector<8xf32>
    %84 = vector.multi_reduction <maximumf>, %83, %cst_37 [1] : vector<8x128xf32> to vector<8xf32>
    %85 = vector.shape_cast %84 : vector<8xf32> to vector<8x1xf32>
    %86 = vector.broadcast %85 : vector<8x1xf32> to vector<8x128xf32>
    %87 = arith.subf %83, %86 : vector<8x128xf32>
    %88 = math.exp %87 : vector<8x128xf32>
    %cst_38 = arith.constant dense<0.000000e+00> : vector<8xf32>
    %89 = vector.multi_reduction <add>, %88, %cst_38 [1] : vector<8x128xf32> to vector<8xf32>
    %90 = vector.shape_cast %89 : vector<8xf32> to vector<8x1xf32>
    %91 = math.log %90 : vector<8x1xf32>
    %92 = vector.broadcast %91 : vector<8x1xf32> to vector<8x128xf32>
    %93 = arith.subf %87, %92 : vector<8x128xf32>
    %94 = arith.index_cast %77 : i32 to index
    %c0_39 = arith.constant 0 : index
    %95 = vector.load %arg6[%94, %c0_39] : memref<64x128xf32, #tpu.memory_space<vmem>>, vector<8x128xf32>
    tpu.vector_store %arg6[%94, %c0_39], %93 {strides = array<i32>} : memref<64x128xf32, #tpu.memory_space<vmem>>, vector<8x128xf32>,
    %96 = vector.extract_strided_slice %82 {offsets = [0, 128], sizes = [8, 128], strides = [1, 1]} : vector<8x256xf32> to vector<8x128xf32>
    %c4_i32 = arith.constant 4 : i32
    %c8_i32_40 = arith.constant 8 : i32
    %97 = arith.muli %c4_i32, %c8_i32_40 : i32
    %98 = tpu.assume_multiple %97, 8 : i32
    %99 = arith.index_cast %98 : i32 to index
    %c0_41 = arith.constant 0 : index
    %100 = vector.load %arg8[%99, %c0_41] : memref<64x256xf32, #tpu.memory_space<vmem>>, vector<8x256xf32>
    %c0_42 = arith.constant 0 : index
    %c0_43 = arith.constant 0 : index
    %101 = vector.load %arg3[%c0_42, %c0_43] : memref<128x256xf32, #tpu.memory_space<vmem>>, vector<128x256xf32>
    %cst_44 = arith.constant dense<0.000000e+00> : vector<8x256xf32>
    %102 = tpu.matmul %96, %101, %cst_44 {dimension_numbers = #tpu.dot_dimension_numbers<[1], [0], [0], [1], [0, 0, 1, 1], [], []>} : vector<8x128xf32>, vector<128x256xf32>, vector<8x256xf32> -> vector<8x256xf32>
    %103 = arith.addf %100, %102 : vector<8x256xf32>
    %104 = vector.extract_strided_slice %103 {offsets = [0, 0], sizes = [8, 128], strides = [1, 1]} : vector<8x256xf32> to vector<8x128xf32>
    %cst_45 = arith.constant dense<0xFF800000> : vector<8xf32>
    %105 = vector.multi_reduction <maximumf>, %104, %cst_45 [1] : vector<8x128xf32> to vector<8xf32>
    %106 = vector.shape_cast %105 : vector<8xf32> to vector<8x1xf32>
    %107 = vector.broadcast %106 : vector<8x1xf32> to vector<8x128xf32>
    %108 = arith.subf %104, %107 : vector<8x128xf32>
    %109 = math.exp %108 : vector<8x128xf32>
    %cst_46 = arith.constant dense<0.000000e+00> : vector<8xf32>
    %110 = vector.multi_reduction <add>, %109, %cst_46 [1] : vector<8x128xf32> to vector<8xf32>
    %111 = vector.shape_cast %110 : vector<8xf32> to vector<8x1xf32>
    %112 = math.log %111 : vector<8x1xf32>
    %113 = vector.broadcast %112 : vector<8x1xf32> to vector<8x128xf32>
    %114 = arith.subf %108, %113 : vector<8x128xf32>
    %115 = arith.index_cast %98 : i32 to index
    %c0_47 = arith.constant 0 : index
    %116 = vector.load %arg6[%115, %c0_47] : memref<64x128xf32, #tpu.memory_space<vmem>>, vector<8x128xf32>
    tpu.vector_store %arg6[%115, %c0_47], %114 {strides = array<i32>} : memref<64x128xf32, #tpu.memory_space<vmem>>, vector<8x128xf32>,
    %117 = vector.extract_strided_slice %103 {offsets = [0, 128], sizes = [8, 128], strides = [1, 1]} : vector<8x256xf32> to vector<8x128xf32>
    %c5_i32 = arith.constant 5 : i32
    %c8_i32_48 = arith.constant 8 : i32
    %118 = arith.muli %c5_i32, %c8_i32_48 : i32
    %119 = tpu.assume_multiple %118, 8 : i32
    %120 = arith.index_cast %119 : i32 to index
    %c0_49 = arith.constant 0 : index
    %121 = vector.load %arg8[%120, %c0_49] : memref<64x256xf32, #tpu.memory_space<vmem>>, vector<8x256xf32>
    %c0_50 = arith.constant 0 : index
    %c0_51 = arith.constant 0 : index
    %122 = vector.load %arg3[%c0_50, %c0_51] : memref<128x256xf32, #tpu.memory_space<vmem>>, vector<128x256xf32>
    %cst_52 = arith.constant dense<0.000000e+00> : vector<8x256xf32>
    %123 = tpu.matmul %117, %122, %cst_52 {dimension_numbers = #tpu.dot_dimension_numbers<[1], [0], [0], [1], [0, 0, 1, 1], [], []>} : vector<8x128xf32>, vector<128x256xf32>, vector<8x256xf32> -> vector<8x256xf32>
    %124 = arith.addf %121, %123 : vector<8x256xf32>
    %125 = vector.extract_strided_slice %124 {offsets = [0, 0], sizes = [8, 128], strides = [1, 1]} : vector<8x256xf32> to vector<8x128xf32>
    %cst_53 = arith.constant dense<0xFF800000> : vector<8xf32>
    %126 = vector.multi_reduction <maximumf>, %125, %cst_53 [1] : vector<8x128xf32> to vector<8xf32>
    %127 = vector.shape_cast %126 : vector<8xf32> to vector<8x1xf32>
    %128 = vector.broadcast %127 : vector<8x1xf32> to vector<8x128xf32>
    %129 = arith.subf %125, %128 : vector<8x128xf32>
    %130 = math.exp %129 : vector<8x128xf32>
    %cst_54 = arith.constant dense<0.000000e+00> : vector<8xf32>
    %131 = vector.multi_reduction <add>, %130, %cst_54 [1] : vector<8x128xf32> to vector<8xf32>
    %132 = vector.shape_cast %131 : vector<8xf32> to vector<8x1xf32>
    %133 = math.log %132 : vector<8x1xf32>
    %134 = vector.broadcast %133 : vector<8x1xf32> to vector<8x128xf32>
    %135 = arith.subf %129, %134 : vector<8x128xf32>
    %136 = arith.index_cast %119 : i32 to index
    %c0_55 = arith.constant 0 : index
    %137 = vector.load %arg6[%136, %c0_55] : memref<64x128xf32, #tpu.memory_space<vmem>>, vector<8x128xf32>
    tpu.vector_store %arg6[%136, %c0_55], %135 {strides = array<i32>} : memref<64x128xf32, #tpu.memory_space<vmem>>, vector<8x128xf32>,
    %138 = vector.extract_strided_slice %124 {offsets = [0, 128], sizes = [8, 128], strides = [1, 1]} : vector<8x256xf32> to vector<8x128xf32>
    %c6_i32 = arith.constant 6 : i32
    %c8_i32_56 = arith.constant 8 : i32
    %139 = arith.muli %c6_i32, %c8_i32_56 : i32
    %140 = tpu.assume_multiple %139, 8 : i32
    %141 = arith.index_cast %140 : i32 to index
    %c0_57 = arith.constant 0 : index
    %142 = vector.load %arg8[%141, %c0_57] : memref<64x256xf32, #tpu.memory_space<vmem>>, vector<8x256xf32>
    %c0_58 = arith.constant 0 : index
    %c0_59 = arith.constant 0 : index
    %143 = vector.load %arg3[%c0_58, %c0_59] : memref<128x256xf32, #tpu.memory_space<vmem>>, vector<128x256xf32>
    %cst_60 = arith.constant dense<0.000000e+00> : vector<8x256xf32>
    %144 = tpu.matmul %138, %143, %cst_60 {dimension_numbers = #tpu.dot_dimension_numbers<[1], [0], [0], [1], [0, 0, 1, 1], [], []>} : vector<8x128xf32>, vector<128x256xf32>, vector<8x256xf32> -> vector<8x256xf32>
    %145 = arith.addf %142, %144 : vector<8x256xf32>
    %146 = vector.extract_strided_slice %145 {offsets = [0, 0], sizes = [8, 128], strides = [1, 1]} : vector<8x256xf32> to vector<8x128xf32>
    %cst_61 = arith.constant dense<0xFF800000> : vector<8xf32>
    %147 = vector.multi_reduction <maximumf>, %146, %cst_61 [1] : vector<8x128xf32> to vector<8xf32>
    %148 = vector.shape_cast %147 : vector<8xf32> to vector<8x1xf32>
    %149 = vector.broadcast %148 : vector<8x1xf32> to vector<8x128xf32>
    %150 = arith.subf %146, %149 : vector<8x128xf32>
    %151 = math.exp %150 : vector<8x128xf32>
    %cst_62 = arith.constant dense<0.000000e+00> : vector<8xf32>
    %152 = vector.multi_reduction <add>, %151, %cst_62 [1] : vector<8x128xf32> to vector<8xf32>
    %153 = vector.shape_cast %152 : vector<8xf32> to vector<8x1xf32>
    %154 = math.log %153 : vector<8x1xf32>
    %155 = vector.broadcast %154 : vector<8x1xf32> to vector<8x128xf32>
    %156 = arith.subf %150, %155 : vector<8x128xf32>
    %157 = arith.index_cast %140 : i32 to index
    %c0_63 = arith.constant 0 : index
    %158 = vector.load %arg6[%157, %c0_63] : memref<64x128xf32, #tpu.memory_space<vmem>>, vector<8x128xf32>
    tpu.vector_store %arg6[%157, %c0_63], %156 {strides = array<i32>} : memref<64x128xf32, #tpu.memory_space<vmem>>, vector<8x128xf32>,
    %159 = vector.extract_strided_slice %145 {offsets = [0, 128], sizes = [8, 128], strides = [1, 1]} : vector<8x256xf32> to vector<8x128xf32>
    %c7_i32 = arith.constant 7 : i32
    %c8_i32_64 = arith.constant 8 : i32
    %160 = arith.muli %c7_i32, %c8_i32_64 : i32
    %161 = tpu.assume_multiple %160, 8 : i32
    %162 = arith.index_cast %161 : i32 to index
    %c0_65 = arith.constant 0 : index
    %163 = vector.load %arg8[%162, %c0_65] : memref<64x256xf32, #tpu.memory_space<vmem>>, vector<8x256xf32>
    %c0_66 = arith.constant 0 : index
    %c0_67 = arith.constant 0 : index
    %164 = vector.load %arg3[%c0_66, %c0_67] : memref<128x256xf32, #tpu.memory_space<vmem>>, vector<128x256xf32>
    %cst_68 = arith.constant dense<0.000000e+00> : vector<8x256xf32>
    %165 = tpu.matmul %159, %164, %cst_68 {dimension_numbers = #tpu.dot_dimension_numbers<[1], [0], [0], [1], [0, 0, 1, 1], [], []>} : vector<8x128xf32>, vector<128x256xf32>, vector<8x256xf32> -> vector<8x256xf32>
    %166 = arith.addf %163, %165 : vector<8x256xf32>
    %167 = vector.extract_strided_slice %166 {offsets = [0, 0], sizes = [8, 128], strides = [1, 1]} : vector<8x256xf32> to vector<8x128xf32>
    %cst_69 = arith.constant dense<0xFF800000> : vector<8xf32>
    %168 = vector.multi_reduction <maximumf>, %167, %cst_69 [1] : vector<8x128xf32> to vector<8xf32>
    %169 = vector.shape_cast %168 : vector<8xf32> to vector<8x1xf32>
    %170 = vector.broadcast %169 : vector<8x1xf32> to vector<8x128xf32>
    %171 = arith.subf %167, %170 : vector<8x128xf32>
    %172 = math.exp %171 : vector<8x128xf32>
    %cst_70 = arith.constant dense<0.000000e+00> : vector<8xf32>
    %173 = vector.multi_reduction <add>, %172, %cst_70 [1] : vector<8x128xf32> to vector<8xf32>
    %174 = vector.shape_cast %173 : vector<8xf32> to vector<8x1xf32>
    %175 = math.log %174 : vector<8x1xf32>
    %176 = vector.broadcast %175 : vector<8x1xf32> to vector<8x128xf32>
    %177 = arith.subf %171, %176 : vector<8x128xf32>
    %178 = arith.index_cast %161 : i32 to index
    %c0_71 = arith.constant 0 : index
    %179 = vector.load %arg6[%178, %c0_71] : memref<64x128xf32, #tpu.memory_space<vmem>>, vector<8x128xf32>
    tpu.vector_store %arg6[%178, %c0_71], %177 {strides = array<i32>} : memref<64x128xf32, #tpu.memory_space<vmem>>, vector<8x128xf32>,
    %180 = vector.extract_strided_slice %166 {offsets = [0, 128], sizes = [8, 128], strides = [1, 1]} : vector<8x256xf32> to vector<8x128xf32>
    %c8_i32_72 = arith.constant 8 : i32
    %c0_73 = arith.constant 0 : index
    %c0_74 = arith.constant 0 : index
    %181 = vector.load %arg7[%c0_73, %c0_74] : memref<8x128xf32, #tpu.memory_space<vmem>>, vector<8x128xf32>
    tpu.vector_store %arg7[%c0_73, %c0_74], %180 {strides = array<i32>} : memref<8x128xf32, #tpu.memory_space<vmem>>, vector<8x128xf32>,
    return
  }
  func.func @transform_0(%arg0: i32) -> (i32, i32) {
    %c0_i32 = arith.constant 0 : i32
    %c0_i32_0 = arith.constant 0 : i32
    %c0_i32_1 = arith.constant 0 : i32
    return %c0_i32, %c0_i32_0 : i32, i32
  }
  func.func @transform_1(%arg0: i32) -> (i32, i32) {
    %c0_i32 = arith.constant 0 : i32
    %c0_i32_0 = arith.constant 0 : i32
    %c0_i32_1 = arith.constant 0 : i32
    return %c0_i32, %c0_i32_0 : i32, i32
  }
  func.func @transform_2(%arg0: i32) -> (i32, i32) {
    %c0_i32 = arith.constant 0 : i32
    %c0_i32_0 = arith.constant 0 : i32
    %c0_i32_1 = arith.constant 0 : i32
    return %c0_i32, %c0_i32_0 : i32, i32
  }
  func.func @transform_3(%arg0: i32) -> (i32, i32) {
    %c0_i32 = arith.constant 0 : i32
    %c0_i32_0 = arith.constant 0 : i32
    %c0_i32_1 = arith.constant 0 : i32
    return %c0_i32, %c0_i32_0 : i32, i32
  }
  func.func @transform_4(%arg0: i32) -> (i32, i32) {
    %c0_i32 = arith.constant 0 : i32
    %c0_i32_0 = arith.constant 0 : i32
    %c0_i32_1 = arith.constant 0 : i32
    return %c0_i32, %c0_i32_0 : i32, i32
  }
  func.func @transform_5(%arg0: i32) -> (i32, i32) {
    %c0_i32 = arith.constant 0 : i32
    %c0_i32_0 = arith.constant 0 : i32
    %c0_i32_1 = arith.constant 0 : i32
    return %c0_i32, %c0_i32_0 : i32, i32
  }
  func.func @transform_6(%arg0: i32) -> (i32, i32) {
    %c0_i32 = arith.constant 0 : i32
    %c0_i32_0 = arith.constant 0 : i32
    %c0_i32_1 = arith.constant 0 : i32
    return %c0_i32, %c0_i32_0 : i32, i32
  }
}

</mosaic_0001>

<bundles_post_ra>
// kernel: rnn_forward_batched.1
= control target key start
LH: loop header
LB: loop body
LE: loop exit
PB: predicated region body
PF: predicated region fallthrough
CT: control target
= control target key end

     0   :  { %12 = vsyncpa [#allocation4], 0  ;;  %s1848_s0 = inlined_call_operand.vmem [shape: s32[64,1], index: 0, kind: input, shape index: {}]   ;;  %s1849_s1 = inlined_call_operand.hbm [shape: f32[128,256], index: 1, kind: input, shape index: {}]   ;;  %s1850_s2 = inlined_call_operand.hbm [shape: f32[128,256], index: 2, kind: input, shape index: {}]   ;;  %s1851_s3 = inlined_call_operand.vmem [shape: f32[1,256], index: 3, kind: input, shape index: {}]   ;;  %s1852_s4 = inlined_call_operand.vmem [shape: f32[8,128], index: 4, kind: input, shape index: {}, may-alias: {4,6}]   ;;  %s1853_s5 = inlined_call_operand.vmem [shape: f32[64,128], index: 5, kind: output, shape index: {0}]   ;;  %s1854_s6 = inlined_call_operand.vmem [shape: f32[8,128], index: 6, kind: output, shape index: {1}, may-alias: {4,6}]  }
   0x1   :  { %13 = vsyncpa [#allocation6], 0  ;;  %s1383_s21 = smov [#allocation3]  }
   0x2   :  { %s21_s22 = sshll.u32 %s1383_s21, 4  ;;  %s22_s22 = int_to_ptr.vmem [resolvable:$true] %s21_s22 }
   0x3   :  { %s1347_s23 = scalar_lea.vmem %s22_s22, 4096  ;;  %p1352_p1 = scmp.lt.s32.totalorder %s22_s22, %s22_s22 }
   0x4   :  { %p1348_p0 = scmp.ne.s32.totalorder %s22_s22, %s1347_s23  ;;  %p1353_p2 = scmp.lt.s32.totalorder %s1347_s23, %s1347_s23 }
   0x6   :  { %p1354_p3 = por %p1353_p2, %p1352_p1 }
   0x8   :  { %p1355_p4 = pnand %p1354_p3, %p1348_p0 }
   0xa   :  { %1358 = shalt.err (!%p1355_p4)
}
   0xb   :  { %s1384_s24 = smov 256   ;;  %s1385_s25 = smov 16  }
   0xc   :  { %27 = dma.hbm_to_vmem [thread:$0]  %s1849_s1, 4096, %s22_s22, [#allocation4], %s1384_s24, %s1384_s24, %s1385_s25  }
   0xd   :  { %s1386_s28 = smov [#allocation5]  }
   0xe   :  { %s33_s29 = sshll.u32 %s1386_s28, 4  ;;  %s34_s29 = int_to_ptr.vmem [resolvable:$true] %s33_s29 }
   0xf   :  { %s1367_s30 = scalar_lea.vmem %s34_s29, 4096  ;;  %p1372_p6 = scmp.lt.s32.totalorder %s34_s29, %s34_s29 }
  0x10   :  { %p1368_p5 = scmp.ne.s32.totalorder %s34_s29, %s1367_s30  ;;  %p1373_p7 = scmp.lt.s32.totalorder %s1367_s30, %s1367_s30 }
  0x12   :  { %p1374_p8 = por %p1373_p7, %p1372_p6 }
  0x14   :  { %p1375_p9 = pnand %p1374_p8, %p1368_p5 }
  0x16   :  { %1378 = shalt.err (!%p1375_p9)
}
  0x17   :  { %39 = dma.hbm_to_vmem [thread:$0]  %s1850_s2, 4096, %s34_s29, [#allocation6], %s1384_s24, %s1384_s24, %s1385_s25  }
  0x18   :  { %1379 = dma.done.wait [#allocation4], 4096  }
  0x19   :  { %1380 = vsyncadd [#allocation4], 4294963200 }
  0x1a   :  { %1381 = dma.done.wait [#allocation6], 4096  }
  0x1b   :  { %1382 = vsyncadd [#allocation6], 4294963200  ;;  %v1387_v0 = vmov 0   ;;  %v1388_v1 = vmov 0.0   ;;  %v50_v2 = vld [vmem:[%s1848_s0] sm:$0xff]  ;;  %v52_v3 = vld [vmem:[%s1848_s0 + $0x10] sm:$0xff] }
  0x1c   :  { %1305 = vset.pattern.permute.xlu0 %v1387_v0  ;;  %1306 = vset.pattern.permute.xlu1 %v1387_v0  ;;  %v51_v4 = vld [vmem:[%s1848_s0 + $0x8] sm:$0xff]  ;;  %v53_v5 = vld [vmem:[%s1848_s0 + $0x18] sm:$0xff]  ;;  %v138_v8 = vld [vmem:[#allocation3 + $0xf0] sm:$0xff] }
  0x1d   :  { %216 = vmatprep.mubr.f32.mxu0 %v1388_v1  ;;  %383 = vmatprep.mubr.f32.mxu1 %v1388_v1  ;;  %v139_v6 = vld [vmem:[#allocation3 + $0xf8] sm:$0xff]  ;;  %v1448_v9 = vld [vmem:[#allocation5 + $0xf0] sm:$0xff]  ;;  %v137_v10 = vld [vmem:[#allocation3 + $0xe8] sm:$0xff] }
  0x1e   :  { %61 = vperm.xlu0 %1305, %v50_v2   ;;  %67 = vperm.xlu1 %1306, %v52_v3   ;;  %v1445_v7 = vld [vmem:[#allocation5 + $0xf8] sm:$0xff]  ;;  %v1451_v11 = vld [vmem:[#allocation5 + $0xe8] sm:$0xff]  ;;  %v136_v12 = vld [vmem:[#allocation3 + $0xe0] sm:$0xff] }
  0x1f   :  { %152 = vmatprep.subr.mxu0 %v139_v6  ;;  %319 = vmatprep.subr.mxu1 %v1445_v7  ;;  %v1453_v13 = vld [vmem:[#allocation5 + $0xe0] sm:$0xff]  ;;  %v135_v14 = vld [vmem:[#allocation3 + $0xd8] sm:$0xff]  ;;  %v55_v17 = vld [vmem:[%s1848_s0 + $0x28] sm:$0xff] }
  0x20   :  { %153 = vmatpush1.msra.mxu0 %v138_v8  ;;  %320 = vmatpush1.msra.mxu1 %v1448_v9  ;;  %v1455_v15 = vld [vmem:[#allocation5 + $0xd8] sm:$0xff]  ;;  %v54_v16 = vld [vmem:[%s1848_s0 + $0x20] sm:$0xff]  ;;  %v134_v18 = vld [vmem:[#allocation3 + $0xd0] sm:$0xff] }
  0x21   :  { %154 = vmatprep.subr.mxu0 %v137_v10  ;;  %321 = vmatprep.subr.mxu1 %v1451_v11  ;;  %v1465_v19 = vld [vmem:[#allocation5 + $0xd0] sm:$0xff]  ;;  %v133_v20 = vld [vmem:[#allocation3 + $0xc8] sm:$0xff]  ;;  %v132_v22 = vld [vmem:[#allocation3 + $0xc0] sm:$0xff] }
  0x22   :  { %64 = vperm.xlu0 %1305, %v51_v4   ;;  %70 = vperm.xlu1 %1306, %v53_v5   ;;  %v1468_v21 = vld [vmem:[#allocation5 + $0xc8] sm:$0xff]  ;;  %v1470_v23 = vld [vmem:[#allocation5 + $0xc0] sm:$0xff]  ;;  %v56_v24 = vld [vmem:[%s1848_s0 + $0x30] sm:$0xff] }
  0x23   :  { %155 = vmatpush1.msra.mxu0 %v136_v12  ;;  %322 = vmatpush1.msra.mxu1 %v1453_v13  ;;  %v131_v25 = vld [vmem:[#allocation3 + $0xb8] sm:$0xff]  ;;  %v130_v27 = vld [vmem:[#allocation3 + $0xb0] sm:$0xff]  ;;  %v129_v29 = vld [vmem:[#allocation3 + $0xa8] sm:$0xff] }
  0x24   :  { %156 = vmatprep.subr.mxu0 %v135_v14  ;;  %323 = vmatprep.subr.mxu1 %v1455_v15  ;;  %v1477_v26 = vld [vmem:[#allocation5 + $0xb8] sm:$0xff]  ;;  %v1480_v28 = vld [vmem:[#allocation5 + $0xb0] sm:$0xff]  ;;  %v1482_v30 = vld [vmem:[#allocation5 + $0xa8] sm:$0xff] }
  0x25   :  { %157 = vmatpush1.msra.mxu0 %v134_v18  ;;  %324 = vmatpush1.msra.mxu1 %v1465_v19  ;;  %v128_v31 = vld [vmem:[#allocation3 + $0xa0] sm:$0xff]  ;;  %v127_v33 = vld [vmem:[#allocation3 + $0x98] sm:$0xff]  ;;  %v126_v35 = vld [vmem:[#allocation3 + $0x90] sm:$0xff] }
  0x26   :  { %73 = vperm.xlu0 %1305, %v54_v16   ;;  %76 = vperm.xlu1 %1306, %v55_v17   ;;  %v1485_v32 = vld [vmem:[#allocation5 + $0xa0] sm:$0xff]  ;;  %v1488_v34 = vld [vmem:[#allocation5 + $0x98] sm:$0xff]  ;;  %v1491_v36 = vld [vmem:[#allocation5 + $0x90] sm:$0xff]  ;;  %v58_v17 = vlaneseq }
  0x27   :  { %158 = vmatprep.subr.mxu0 %v133_v20  ;;  %325 = vmatprep.subr.mxu1 %v1468_v21  ;;  %v125_v37 = vld [vmem:[#allocation3 + $0x88] sm:$0xff]  ;;  %v124_v39 = vld [vmem:[#allocation3 + $0x80] sm:$0xff]  ;;  %v123_v41 = vld [vmem:[#allocation3 + $0x78] sm:$0xff] }
  0x28   :  { %159 = vmatpush1.msra.mxu0 %v132_v22  ;;  %326 = vmatpush1.msra.mxu1 %v1470_v23  ;;  %v1494_v38 = vld [vmem:[#allocation5 + $0x88] sm:$0xff]  ;;  %v1497_v40 = vld [vmem:[#allocation5 + $0x80] sm:$0xff]  ;;  %v1500_v42 = vld [vmem:[#allocation5 + $0x78] sm:$0xff]  ;;  %v1592_v18 = vand.u32 127, %v58_v17  ;;  %v1389_v22 = vmov 1.0  }
  0x29   :  { %160 = vmatprep.subr.mxu0 %v131_v25  ;;  %327 = vmatprep.subr.mxu1 %v1477_v26  ;;  %v122_v43 = vld [vmem:[#allocation3 + $0x70] sm:$0xff]  ;;  %v121_v45 = vld [vmem:[#allocation3 + $0x68] sm:$0xff]  ;;  %v120_v47 = vld [vmem:[#allocation3 + $0x60] sm:$0xff] }
  0x2a   :  { %79 = vperm.xlu0 %1305, %v56_v24   ;;  %161 = vmatpush1.msra.mxu0 %v130_v27  ;;  %v1503_v44 = vld [vmem:[#allocation5 + $0x70] sm:$0xff]  ;;  %v1506_v46 = vld [vmem:[#allocation5 + $0x68] sm:$0xff]  ;;  %v1509_v48 = vld [vmem:[#allocation5 + $0x60] sm:$0xff] }
  0x2b   :  { %328 = vmatpush1.msra.mxu1 %v1480_v28  ;;  %162 = vmatprep.subr.mxu0 %v129_v29  ;;  %v119_v49 = vld [vmem:[#allocation3 + $0x58] sm:$0xff]  ;;  %v118_v51 = vld [vmem:[#allocation3 + $0x50] sm:$0xff]  ;;  %v117_v53 = vld [vmem:[#allocation3 + $0x48] sm:$0xff] }
  0x2c   :  { %329 = vmatprep.subr.mxu1 %v1482_v30  ;;  %163 = vmatpush1.msra.mxu0 %v128_v31  ;;  %v1512_v50 = vld [vmem:[#allocation5 + $0x58] sm:$0xff]  ;;  %v1515_v52 = vld [vmem:[#allocation5 + $0x50] sm:$0xff]  ;;  %v1518_v54 = vld [vmem:[#allocation5 + $0x48] sm:$0xff] }
  0x2d   :  { %330 = vmatpush1.msra.mxu1 %v1485_v32  ;;  %164 = vmatprep.subr.mxu0 %v127_v33  ;;  %v116_v55 = vld [vmem:[#allocation3 + $0x40] sm:$0xff]  ;;  %v115_v57 = vld [vmem:[#allocation3 + $0x38] sm:$0xff]  ;;  %v114_v59 = vld [vmem:[#allocation3 + $0x30] sm:$0xff] }
  0x2e   :  { %331 = vmatprep.subr.mxu1 %v1488_v34  ;;  %165 = vmatpush1.msra.mxu0 %v126_v35  ;;  %v1521_v56 = vld [vmem:[#allocation5 + $0x40] sm:$0xff]  ;;  %v1524_v58 = vld [vmem:[#allocation5 + $0x38] sm:$0xff]  ;;  %v1527_v60 = vld [vmem:[#allocation5 + $0x30] sm:$0xff] }
  0x2f   :  { %332 = vmatpush1.msra.mxu1 %v1491_v36  ;;  %166 = vmatprep.subr.mxu0 %v125_v37  ;;  %v113_v61 = vld [vmem:[#allocation3 + $0x28] sm:$0xff]  ;;  %v112_v63 = vld [vmem:[#allocation3 + $0x20] sm:$0xff]  ;;  %v111_v2 = vld [vmem:[#allocation3 + $0x18] sm:$0xff]  ;;  %v143_v37 = vshrl.u32 %v58_v17, 7 }
  0x30   :  { %333 = vmatprep.subr.mxu1 %v1494_v38  ;;  %167 = vmatpush1.msra.mxu0 %v124_v39  ;;  %v1530_v62 = vld [vmem:[#allocation5 + $0x28] sm:$0xff]  ;;  %v1533_v0 = vld [vmem:[#allocation5 + $0x20] sm:$0xff]  ;;  %v1536_v3 = vld [vmem:[#allocation5 + $0x18] sm:$0xff] }
  0x31   :  { %334 = vmatpush1.msra.mxu1 %v1497_v40  ;;  %168 = vmatprep.subr.mxu0 %v123_v41  ;;  %v110_v4 = vld [vmem:[#allocation3 + $0x10] sm:$0xff]  ;;  %v109_v6 = vld [vmem:[#allocation3 + $0x8] sm:$0xff]  ;;  %v108_v10 = vld [vmem:[#allocation3] sm:$0xff]  ;;  %v144_v39 = vsub.s32 0, %v143_v37 }
  0x32   :  { %335 = vmatprep.subr.mxu1 %v1500_v42  ;;  %169 = vmatpush1.msra.mxu0 %v122_v43  ;;  %v1539_v5 = vld [vmem:[#allocation5 + $0x10] sm:$0xff]  ;;  %v1542_v8 = vld [vmem:[#allocation5 + $0x8] sm:$0xff]  ;;  %v1545_v12 = vld [vmem:[#allocation5] sm:$0xff]  ;;  %v148_v43 = vsub.s32 1, %v143_v37 }
  0x33   :  { %336 = vmatpush1.msra.mxu1 %v1503_v44  ;;  %170 = vmatprep.subr.mxu0 %v121_v45  ;;  %v57_v14 = vld [vmem:[%s1848_s0 + $0x38] sm:$0xff]  ;;  %v281_v16 = vld [vmem:[%s1852_s4] sm:$0xff] }
  0x34   :  { %337 = vmatprep.subr.mxu1 %v1506_v46  ;;  %171 = vmatpush1.msra.mxu0 %v120_v47  ;;  %v140_v41 = vld [vmem:[%s1851_s3] sm:$0x3] }
  0x35   :  { %338 = vmatpush1.msra.mxu1 %v1509_v48  ;;  %172 = vmatprep.subr.mxu0 %v119_v49  ;;  %v1646_v45 = vrot.slane %v140_v41, %v144_v39  ;;  %v1648_v47 = vrot.slane %v140_v41, %v148_v43 }
  0x36   :  { %339 = vmatprep.subr.mxu1 %v1512_v50  ;;  %173 = vmatpush1.msra.mxu0 %v118_v51 }
  0x37   :  { %340 = vmatpush1.msra.mxu1 %v1515_v52  ;;  %174 = vmatprep.subr.mxu0 %v117_v53 }
  0x38   :  { %341 = vmatprep.subr.mxu1 %v1518_v54  ;;  %175 = vmatpush1.msra.mxu0 %v116_v55 }
  0x39   :  { %342 = vmatpush1.msra.mxu1 %v1521_v56  ;;  %176 = vmatprep.subr.mxu0 %v115_v57 }
  0x3a   :  { %343 = vmatprep.subr.mxu1 %v1524_v58  ;;  %177 = vmatpush1.msra.mxu0 %v114_v59 }
  0x3b   :  { %344 = vmatpush1.msra.mxu1 %v1527_v60  ;;  %178 = vmatprep.subr.mxu0 %v113_v61 }
  0x3c   :  { %345 = vmatprep.subr.mxu1 %v1530_v62  ;;  %179 = vmatpush1.msra.mxu0 %v112_v63 }
  0x3d   :  { %346 = vmatpush1.msra.mxu1 %v1533_v0  ;;  %180 = vmatprep.subr.mxu0 %v111_v2 }
  0x3e   :  { %347 = vmatprep.subr.mxu1 %v1536_v3  ;;  %181 = vmatpush1.msra.mxu0 %v110_v4 }
  0x3f   :  { %348 = vmatpush1.msra.mxu1 %v1539_v5  ;;  %182 = vmatprep.subr.mxu0 %v109_v6 }
  0x40   :  { %349 = vmatprep.subr.mxu1 %v1542_v8  ;;  %183 = vmatpush1.msra.mxu0 %v108_v10 }
  0x41   :  { %350 = vmatpush1.msra.mxu1 %v1545_v12  ;;  %82 = vperm.xlu1 %1306, %v57_v14  }
  0x42   :  { %384 = vmatmul.mubr.f32.vlgmr.msra.gmra.mxu1 %v281_v16  ;;  %440 = vmatprep.subr.mxu0 %v1445_v7 }
  0x43   :  { %562 = vmatprep.subr.mxu1 %v1445_v7  ;;  %626 = vmatprep.mubr.f32.mxu1 %v1388_v1 }
  0x44   :  { %563 = vmatpush1.msra.mxu1 %v1448_v9 }
  0x45   :  { %564 = vmatprep.subr.mxu1 %v1451_v11 }
  0x46   :  { %565 = vmatpush1.msra.mxu1 %v1453_v13 }
  0x47   :  { %566 = vmatprep.subr.mxu1 %v1455_v15 }
  0x48   :  { %567 = vmatpush1.msra.mxu1 %v1465_v19 }
  0x49   :  { %568 = vmatprep.subr.mxu1 %v1468_v21 }
  0x4a   :  { %569 = vmatpush1.msra.mxu1 %v1470_v23 }
  0x4b   :  { %570 = vmatprep.subr.mxu1 %v1477_v26 }
  0x4c   :  { %571 = vmatpush1.msra.mxu1 %v1480_v28 }
  0x4d   :  { %572 = vmatprep.subr.mxu1 %v1482_v30 }
  0x4e   :  { %573 = vmatpush1.msra.mxu1 %v1485_v32 }
  0x4f   :  { %574 = vmatprep.subr.mxu1 %v1488_v34 }
  0x50   :  { %575 = vmatpush1.msra.mxu1 %v1491_v36 }
  0x51   :  { %576 = vmatprep.subr.mxu1 %v1494_v38 }
  0x52   :  { %577 = vmatpush1.msra.mxu1 %v1497_v40 }
  0x53   :  { %578 = vmatprep.subr.mxu1 %v1500_v42 }
  0x54   :  { %579 = vmatpush1.msra.mxu1 %v1503_v44 }
  0x55   :  { %580 = vmatprep.subr.mxu1 %v1506_v46 }
  0x56   :  { %581 = vmatpush1.msra.mxu1 %v1509_v48 }
  0x57   :  { %582 = vmatprep.subr.mxu1 %v1512_v50 }
  0x58   :  { %583 = vmatpush1.msra.mxu1 %v1515_v52 }
  0x59   :  { %584 = vmatprep.subr.mxu1 %v1518_v54 }
  0x5a   :  { %585 = vmatpush1.msra.mxu1 %v1521_v56 }
  0x5b   :  { %586 = vmatprep.subr.mxu1 %v1524_v58 }
  0x5c   :  { %587 = vmatpush1.msra.mxu1 %v1527_v60 }
  0x5d   :  { %588 = vmatprep.subr.mxu1 %v1530_v62 }
  0x5e   :  { %589 = vmatpush1.msra.mxu1 %v1533_v0 }
  0x5f   :  { %590 = vmatprep.subr.mxu1 %v1536_v3 }
  0x60   :  { %591 = vmatpush1.msra.mxu1 %v1539_v5 }
  0x61   :  { %592 = vmatprep.subr.mxu1 %v1542_v8 }
  0x62   :  { %593 = vmatpush1.msra.mxu1 %v1545_v12 }
  0x63   :  { %806 = vmatprep.subr.mxu1 %v1445_v7 }
  0x99   :  { %v62_v20 = vpop.permute.xlu0 %61  ;;  %v68_v24 = vpop.permute.xlu1 %67 }
  0x9a   :  { %vm84_vm0 = vcmp.eq.s32.totalorder %v1592_v18, %v62_v20  ;;  %vm86_vm2 = vcmp.eq.s32.totalorder %v1592_v18, %v68_v24 }
  0x9b   :  { %1283 = vmatmul.mubr.msk.f32.vlgmr.msra.gmra.mxu0 %vm84_vm0, %v1389_v22 }
  0x9c   :  { %222 = vmatprep.mubr.f32.mxu0 %v1388_v1  ;;  %441 = vmatpush1.msra.mxu0 %v1448_v9 }
  0x9d   :  { %v65_v25 = vpop.permute.xlu0 %64  ;;  %442 = vmatprep.subr.mxu0 %v1451_v11  ;;  %v71_v27 = vpop.permute.xlu1 %70 }
  0x9e   :  { %vm85_vm1 = vcmp.eq.s32.totalorder %v1592_v18, %v65_v25  ;;  %443 = vmatpush1.msra.mxu0 %v1453_v13  ;;  %vm87_vm3 = vcmp.eq.s32.totalorder %v1592_v18, %v71_v27 }
  0x9f   :  { %1284 = vmatmul.mubr.msk.f32.gmra.mxu0 %vm85_vm1, %v1389_v22  ;;  %444 = vmatprep.subr.mxu0 %v1455_v15 }
  0xa0   :  { %228 = vmatprep.mubr.f32.mxu0 %v1388_v1  ;;  %445 = vmatpush1.msra.mxu0 %v1465_v19 }
  0xa1   :  { %446 = vmatprep.subr.mxu0 %v1468_v21  ;;  %v74_v29 = vpop.permute.xlu0 %73  ;;  %v77_v31 = vpop.permute.xlu1 %76 }
  0xa2   :  { %447 = vmatpush1.msra.mxu0 %v1470_v23  ;;  %vm88_vm4 = vcmp.eq.s32.totalorder %v1592_v18, %v74_v29  ;;  %vm89_vm5 = vcmp.eq.s32.totalorder %v1592_v18, %v77_v31 }
  0xa3   :  { %1285 = vmatmul.mubr.msk.f32.gmra.mxu0 %vm86_vm2, %v1389_v22  ;;  %448 = vmatprep.subr.mxu0 %v1477_v26 }
  0xa4   :  { %234 = vmatprep.mubr.f32.mxu0 %v1388_v1  ;;  %449 = vmatpush1.msra.mxu0 %v1480_v28 }
  0xa5   :  { %450 = vmatprep.subr.mxu0 %v1482_v30  ;;  %v80_v33 = vpop.permute.xlu0 %79 }
  0xa6   :  { %451 = vmatpush1.msra.mxu0 %v1485_v32  ;;  %vm90_vm6 = vcmp.eq.s32.totalorder %v1592_v18, %v80_v33 }
  0xa7   :  { %1286 = vmatmul.mubr.msk.f32.gmra.mxu0 %vm87_vm3, %v1389_v22  ;;  %452 = vmatprep.subr.mxu0 %v1488_v34 }
  0xa8   :  { %240 = vmatprep.mubr.f32.mxu0 %v1388_v1  ;;  %453 = vmatpush1.msra.mxu0 %v1491_v36 }
  0xa9   :  { %454 = vmatprep.subr.mxu0 %v1494_v38 }
  0xaa   :  { %455 = vmatpush1.msra.mxu0 %v1497_v40 }
  0xab   :  { %1287 = vmatmul.mubr.msk.f32.gmra.mxu0 %vm88_vm4, %v1389_v22  ;;  %456 = vmatprep.subr.mxu0 %v1500_v42 }
  0xac   :  { %246 = vmatprep.mubr.f32.mxu0 %v1388_v1  ;;  %457 = vmatpush1.msra.mxu0 %v1503_v44 }
  0xad   :  { %458 = vmatprep.subr.mxu0 %v1506_v46 }
  0xae   :  { %459 = vmatpush1.msra.mxu0 %v1509_v48 }
  0xaf   :  { %1288 = vmatmul.mubr.msk.f32.gmra.mxu0 %vm89_vm5, %v1389_v22  ;;  %460 = vmatprep.subr.mxu0 %v1512_v50 }
  0xb0   :  { %252 = vmatprep.mubr.f32.mxu0 %v1388_v1  ;;  %461 = vmatpush1.msra.mxu0 %v1515_v52 }
  0xb1   :  { %462 = vmatprep.subr.mxu0 %v1518_v54 }
  0xb2   :  { %463 = vmatpush1.msra.mxu0 %v1521_v56 }
  0xb3   :  { %1289 = vmatmul.mubr.msk.f32.gmra.mxu0 %vm90_vm6, %v1389_v22  ;;  %464 = vmatprep.subr.mxu0 %v1524_v58 }
  0xb4   :  { %258 = vmatprep.mubr.f32.mxu0 %v1388_v1  ;;  %465 = vmatpush1.msra.mxu0 %v1527_v60 }
  0xb5   :  { %466 = vmatprep.subr.mxu0 %v1530_v62 }
  0xb6   :  { %467 = vmatpush1.msra.mxu0 %v1533_v0 }
  0xb7   :  { %468 = vmatprep.subr.mxu0 %v1536_v3 }
  0xb8   :  { %469 = vmatpush1.msra.mxu0 %v1539_v5 }
  0xb9   :  { %470 = vmatprep.subr.mxu0 %v1542_v8 }
  0xba   :  { %471 = vmatpush1.msra.mxu0 %v1545_v12 }
  0xbb   :  { %684 = vmatprep.subr.mxu0 %v1445_v7 }
  0xbc   :  { %v83_v35 = vpop.permute.xlu1 %82 }
  0xbd   :  { %vm91_vm7 = vcmp.eq.s32.totalorder %v1592_v18, %v83_v35 }
  0xbe   :  { %1290 = vmatmul.mubr.msk.f32.gmra.mxu0 %vm91_vm7, %v1389_v22 }
  0xbf   :  { %504 = vmatprep.mubr.f32.mxu0 %v1388_v1 }
 0x102   :  { %v385_v51 = vpop.f32.mrf.mxu1 }
 0x104   :  { %v387_v61 = vpop.f32.mrf.mxu1 }
 0x15b   :  { %v218_v49 = vpop.f32.mrf.mxu0 }
 0x15c   :  { %v219_v53 = vadd.f32 %v218_v49, %v1646_v45 }
 0x15d   :  { %v220_v55 = vpop.f32.mrf.mxu0 }
 0x15e   :  { %v1651_v57 = vadd.f32 %v385_v51, %v219_v53  ;;  %v221_v59 = vadd.f32 %v220_v55, %v1648_v47 }
 0x15f   :  { %v224_v63 = vpop.f32.mrf.mxu0 }
 0x160   :  { %v391_v2 = vadd.f32 %v387_v61, %v221_v59  ;;  %392 = vmax.xlane.f32.xlu0 %v1651_v57  ;;  %v225_v59 = vadd.f32 %v224_v63, %v1646_v45 }
 0x161   :  { %v226_v4 = vpop.f32.mrf.mxu0 }
 0x162   :  { %505 = vmatmul.mubr.f32.vlgmr.msra.gmra.mxu0 %v391_v2  ;;  %v227_v2 = vadd.f32 %v226_v4, %v1648_v47 }
 0x163   :  { %v230_v6 = vpop.f32.mrf.mxu0  ;;  %685 = vmatpush1.msra.mxu0 %v1448_v9  ;;  %748 = vmatprep.mubr.f32.mxu0 %v1388_v1 }
 0x164   :  { %v1658_v10 = vadd.f32 %v230_v6, %v1646_v45  ;;  %686 = vmatprep.subr.mxu0 %v1451_v11 }
 0x165   :  { %v232_v14 = vpop.f32.mrf.mxu0  ;;  %687 = vmatpush1.msra.mxu0 %v1453_v13 }
 0x166   :  { %v1663_v16 = vadd.f32 %v232_v14, %v1648_v47  ;;  %688 = vmatprep.subr.mxu0 %v1455_v15 }
 0x167   :  { %v236_v17 = vpop.f32.mrf.mxu0  ;;  %689 = vmatpush1.msra.mxu0 %v1465_v19 }
 0x168   :  { %v1668_v18 = vadd.f32 %v236_v17, %v1646_v45  ;;  %690 = vmatprep.subr.mxu0 %v1468_v21 }
 0x169   :  { %v238_v20 = vpop.f32.mrf.mxu0  ;;  %691 = vmatpush1.msra.mxu0 %v1470_v23 }
 0x16a   :  { %v1673_v22 = vadd.f32 %v238_v20, %v1648_v47  ;;  %692 = vmatprep.subr.mxu0 %v1477_v26  ;;  %v1022_v20 = vld [vmem:[#allocation5 + $0x20] sm:$0xff] }
 0x16b   :  { %v242_v24 = vpop.f32.mrf.mxu0  ;;  %693 = vmatpush1.msra.mxu0 %v1480_v28 }
 0x16c   :  { %v1678_v25 = vadd.f32 %v242_v24, %v1646_v45  ;;  %694 = vmatprep.subr.mxu0 %v1482_v30  ;;  %v1020_v24 = vld [vmem:[#allocation5 + $0x10] sm:$0xff] }
 0x16d   :  { %v244_v27 = vpop.f32.mrf.mxu0  ;;  %695 = vmatpush1.msra.mxu0 %v1485_v32 }
 0x16e   :  { %v1683_v29 = vadd.f32 %v244_v27, %v1648_v47  ;;  %696 = vmatprep.subr.mxu0 %v1488_v34  ;;  %v1018_v27 = vld [vmem:[#allocation5] sm:$0xff] }
 0x16f   :  { %v248_v31 = vpop.f32.mrf.mxu0  ;;  %697 = vmatpush1.msra.mxu0 %v1491_v36 }
 0x170   :  { %v1688_v33 = vadd.f32 %v248_v31, %v1646_v45  ;;  %698 = vmatprep.subr.mxu0 %v1494_v38 }
 0x171   :  { %v250_v35 = vpop.f32.mrf.mxu0  ;;  %699 = vmatpush1.msra.mxu0 %v1497_v40 }
 0x172   :  { %v1693_v37 = vadd.f32 %v250_v35, %v1648_v47  ;;  %700 = vmatprep.subr.mxu0 %v1500_v42 }
 0x173   :  { %v254_v39 = vpop.f32.mrf.mxu0  ;;  %701 = vmatpush1.msra.mxu0 %v1503_v44 }
 0x174   :  { %v1698_v41 = vadd.f32 %v254_v39, %v1646_v45  ;;  %702 = vmatprep.subr.mxu0 %v1506_v46 }
 0x175   :  { %v256_v43 = vpop.f32.mrf.mxu0  ;;  %703 = vmatpush1.msra.mxu0 %v1509_v48 }
 0x176   :  { %v1703_v49 = vadd.f32 %v256_v43, %v1648_v47  ;;  %704 = vmatprep.subr.mxu0 %v1512_v50 }
 0x177   :  { %705 = vmatpush1.msra.mxu0 %v1515_v52 }
 0x178   :  { %706 = vmatprep.subr.mxu0 %v1518_v54 }
 0x179   :  { %707 = vmatpush1.msra.mxu0 %v1521_v56 }
 0x17a   :  { %708 = vmatprep.subr.mxu0 %v1524_v58 }
 0x17b   :  { %709 = vmatpush1.msra.mxu0 %v1527_v60 }
 0x17c   :  { %710 = vmatprep.subr.mxu0 %v1530_v62 }
 0x17d   :  { %711 = vmatpush1.msra.mxu0 %v1533_v0 }
 0x17e   :  { %712 = vmatprep.subr.mxu0 %v1536_v3  ;;  %v260_v51 = vpop.f32.mrf.mxu0 }
 0x17f   :  { %713 = vmatpush1.msra.mxu0 %v1539_v5  ;;  %v1716_v53 = vadd.f32 %v260_v51, %v1646_v45 }
 0x180   :  { %714 = vmatprep.subr.mxu0 %v1542_v8  ;;  %v1721_v55 = vpop.f32.mrf.mxu0 }
 0x181   :  { %715 = vmatpush1.msra.mxu0 %v1545_v12 }
 0x182   :  { %928 = vmatprep.subr.mxu0 %v1445_v7 }
 0x1e9   :  { %v393_v43 = vpop.xlane.xlu0 %392 }
 0x1ea   :  { %v394_v51 = vsub.f32 %v1651_v57, %v393_v43 }
 0x222   :  { %v506_v61 = vpop.f32.mrf.mxu0 }
 0x223   :  { %v1725_v6 = vadd.f32 %v506_v61, %v225_v59 }
 0x224   :  { %v508_v14 = vpop.f32.mrf.mxu0 }
 0x225   :  { %v512_v17 = vadd.f32 %v508_v14, %v227_v2  ;;  %513 = vmax.xlane.f32.xlu1 %v1725_v6  ;;  %v395_v2 = vmul.f32 1.442695, %v394_v51 }
 0x227   :  { %627 = vmatmul.mubr.f32.vlgmr.msra.gmra.mxu1 %v512_v17  ;;  %1307 = vpow2.f32 %v395_v2 }
 0x228   :  { %807 = vmatpush1.msra.mxu1 %v1448_v9  ;;  %870 = vmatprep.mubr.f32.mxu1 %v1388_v1 }
 0x229   :  { %808 = vmatprep.subr.mxu1 %v1451_v11 }
 0x22a   :  { %809 = vmatpush1.msra.mxu1 %v1453_v13 }
 0x22b   :  { %810 = vmatprep.subr.mxu1 %v1455_v15 }
 0x22c   :  { %811 = vmatpush1.msra.mxu1 %v1465_v19 }
 0x22d   :  { %812 = vmatprep.subr.mxu1 %v1468_v21 }
 0x22e   :  { %813 = vmatpush1.msra.mxu1 %v1470_v23 }
 0x22f   :  { %814 = vmatprep.subr.mxu1 %v1477_v26 }
 0x230   :  { %815 = vmatpush1.msra.mxu1 %v1480_v28 }
 0x231   :  { %816 = vmatprep.subr.mxu1 %v1482_v30 }
 0x232   :  { %817 = vmatpush1.msra.mxu1 %v1485_v32 }
 0x233   :  { %818 = vmatprep.subr.mxu1 %v1488_v34 }
 0x234   :  { %819 = vmatpush1.msra.mxu1 %v1491_v36  ;;  %v1308_v57 = vpop.eup %1307 }
 0x235   :  { %820 = vmatprep.subr.mxu1 %v1494_v38 }
 0x236   :  { %821 = vmatpush1.msra.mxu1 %v1497_v40 }
 0x237   :  { %822 = vmatprep.subr.mxu1 %v1500_v42 }
 0x238   :  { %823 = vmatpush1.msra.mxu1 %v1503_v44 }
 0x239   :  { %824 = vmatprep.subr.mxu1 %v1506_v46 }
 0x23a   :  { %825 = vmatpush1.msra.mxu1 %v1509_v48 }
 0x23b   :  { %826 = vmatprep.subr.mxu1 %v1512_v50 }
 0x23c   :  { %827 = vmatpush1.msra.mxu1 %v1515_v52 }
 0x23d   :  { %828 = vmatprep.subr.mxu1 %v1518_v54 }
 0x23e   :  { %829 = vmatpush1.msra.mxu1 %v1521_v56 }
 0x23f   :  { %830 = vmatprep.subr.mxu1 %v1524_v58 }
 0x240   :  { %831 = vmatpush1.msra.mxu1 %v1527_v60 }
 0x241   :  { %832 = vmatprep.subr.mxu1 %v1530_v62 }
 0x242   :  { %833 = vmatpush1.msra.mxu1 %v1533_v0 }
 0x243   :  { %834 = vmatprep.subr.mxu1 %v1536_v3 }
 0x244   :  { %835 = vmatpush1.msra.mxu1 %v1539_v5 }
 0x245   :  { %836 = vmatprep.subr.mxu1 %v1542_v8 }
 0x246   :  { %837 = vmatpush1.msra.mxu1 %v1545_v12 }
 0x2ae   :  { %v514_v59 = vpop.xlane.xlu1 %513 }
 0x2e7   :  { %v628_v7 = vpop.f32.mrf.mxu1 }
 0x2e8   :  { %v1761_v45 = vadd.f32 %v628_v7, %v1658_v10  ;;  %v1025_v10 = vld [vmem:[#allocation5 + $0x38] sm:$0xff] }
 0x2e9   :  { %v630_v63 = vpop.f32.mrf.mxu1 }
 0x2ea   :  { %v634_v4 = vadd.f32 %v630_v63, %v1663_v16  ;;  %635 = vmax.xlane.f32.xlu0 %v1761_v45  ;;  %v1024_v16 = vld [vmem:[#allocation5 + $0x30] sm:$0xff] }
 0x2ec   :  { %749 = vmatmul.mubr.f32.vlgmr.msra.gmra.mxu0 %v634_v4 }
 0x2ed   :  { %929 = vmatpush1.msra.mxu0 %v1448_v9  ;;  %992 = vmatprep.mubr.f32.mxu0 %v1388_v1 }
 0x2ee   :  { %930 = vmatprep.subr.mxu0 %v1451_v11 }
 0x2ef   :  { %931 = vmatpush1.msra.mxu0 %v1453_v13 }
 0x2f0   :  { %932 = vmatprep.subr.mxu0 %v1455_v15 }
 0x2f1   :  { %933 = vmatpush1.msra.mxu0 %v1465_v19 }
 0x2f2   :  { %934 = vmatprep.subr.mxu0 %v1468_v21 }
 0x2f3   :  { %935 = vmatpush1.msra.mxu0 %v1470_v23 }
 0x2f4   :  { %936 = vmatprep.subr.mxu0 %v1477_v26 }
 0x2f5   :  { %937 = vmatpush1.msra.mxu0 %v1480_v28  ;;  %v1049_v28 = vld [vmem:[#allocation5 + $0xf8] sm:$0xff] }
 0x2f6   :  { %938 = vmatprep.subr.mxu0 %v1482_v30  ;;  %v1048_v30 = vld [vmem:[#allocation5 + $0xf0] sm:$0xff]  ;;  %1050 = vmatprep.subr.mxu1 %v1049_v28 }
 0x2f7   :  { %939 = vmatpush1.msra.mxu0 %v1485_v32  ;;  %v1047_v32 = vld [vmem:[#allocation5 + $0xe8] sm:$0xff] }
 0x2f8   :  { %940 = vmatprep.subr.mxu0 %v1488_v34  ;;  %v1046_v34 = vld [vmem:[#allocation5 + $0xe0] sm:$0xff] }
 0x2f9   :  { %941 = vmatpush1.msra.mxu0 %v1491_v36  ;;  %v1045_v36 = vld [vmem:[#allocation5 + $0xd8] sm:$0xff] }
 0x2fa   :  { %942 = vmatprep.subr.mxu0 %v1494_v38  ;;  %v1044_v38 = vld [vmem:[#allocation5 + $0xd0] sm:$0xff] }
 0x2fb   :  { %943 = vmatpush1.msra.mxu0 %v1497_v40  ;;  %v1043_v40 = vld [vmem:[#allocation5 + $0xc8] sm:$0xff] }
 0x2fc   :  { %944 = vmatprep.subr.mxu0 %v1500_v42  ;;  %v1042_v42 = vld [vmem:[#allocation5 + $0xc0] sm:$0xff] }
 0x2fd   :  { %945 = vmatpush1.msra.mxu0 %v1503_v44  ;;  %v1040_v44 = vld [vmem:[#allocation5 + $0xb0] sm:$0xff] }
 0x2fe   :  { %946 = vmatprep.subr.mxu0 %v1506_v46  ;;  %v1039_v46 = vld [vmem:[#allocation5 + $0xa8] sm:$0xff] }
 0x2ff   :  { %947 = vmatpush1.msra.mxu0 %v1509_v48  ;;  %v1038_v48 = vld [vmem:[#allocation5 + $0xa0] sm:$0xff] }
 0x300   :  { %948 = vmatprep.subr.mxu0 %v1512_v50  ;;  %v1037_v50 = vld [vmem:[#allocation5 + $0x98] sm:$0xff] }
 0x301   :  { %949 = vmatpush1.msra.mxu0 %v1515_v52  ;;  %v1036_v52 = vld [vmem:[#allocation5 + $0x90] sm:$0xff] }
 0x302   :  { %950 = vmatprep.subr.mxu0 %v1518_v54  ;;  %v1035_v54 = vld [vmem:[#allocation5 + $0x88] sm:$0xff] }
 0x303   :  { %951 = vmatpush1.msra.mxu0 %v1521_v56  ;;  %v1034_v56 = vld [vmem:[#allocation5 + $0x80] sm:$0xff] }
 0x304   :  { %952 = vmatprep.subr.mxu0 %v1524_v58  ;;  %v1033_v58 = vld [vmem:[#allocation5 + $0x78] sm:$0xff] }
 0x305   :  { %953 = vmatpush1.msra.mxu0 %v1527_v60  ;;  %v1032_v60 = vld [vmem:[#allocation5 + $0x70] sm:$0xff] }
 0x306   :  { %954 = vmatprep.subr.mxu0 %v1530_v62  ;;  %v1031_v62 = vld [vmem:[#allocation5 + $0x68] sm:$0xff] }
 0x307   :  { %955 = vmatpush1.msra.mxu0 %v1533_v0  ;;  %v1030_v0 = vld [vmem:[#allocation5 + $0x60] sm:$0xff] }
 0x308   :  { %956 = vmatprep.subr.mxu0 %v1536_v3  ;;  %v1029_v3 = vld [vmem:[#allocation5 + $0x58] sm:$0xff] }
 0x309   :  { %957 = vmatpush1.msra.mxu0 %v1539_v5  ;;  %v1028_v5 = vld [vmem:[#allocation5 + $0x50] sm:$0xff] }
 0x30a   :  { %958 = vmatprep.subr.mxu0 %v1542_v8  ;;  %v1027_v8 = vld [vmem:[#allocation5 + $0x48] sm:$0xff] }
 0x30b   :  { %959 = vmatpush1.msra.mxu0 %v1545_v12  ;;  %v1026_v12 = vld [vmem:[#allocation5 + $0x40] sm:$0xff] }
 0x30c   :  { %1172 = vmatprep.subr.mxu0 %v1049_v28 }
 0x373   :  { %v636_v61 = vpop.xlane.xlu0 %635 }
 0x374   :  { %v637_v14 = vsub.f32 %v1761_v45, %v636_v61 }
 0x376   :  { %v638_v7 = vmul.f32 1.442695, %v637_v14 }
 0x378   :  { %1309 = vpow2.f32 %v638_v7 }
 0x3ac   :  { %v750_v9 = vpop.f32.mrf.mxu0 }
 0x3ad   :  { %v1798_v11 = vadd.f32 %v750_v9, %v1668_v18  ;;  %v1023_v18 = vld [vmem:[#allocation5 + $0x28] sm:$0xff] }
 0x3ae   :  { %v752_v13 = vpop.f32.mrf.mxu0 }
 0x3af   :  { %v756_v15 = vadd.f32 %v752_v13, %v1673_v22  ;;  %757 = vmax.xlane.f32.xlu0 %v1798_v11  ;;  %v1021_v22 = vld [vmem:[#allocation5 + $0x18] sm:$0xff] }
 0x3b1   :  { %871 = vmatmul.mubr.f32.vlgmr.msra.gmra.mxu1 %v756_v15  ;;  %v1310_v15 = vpop.eup %1309 }
 0x3b2   :  { %1114 = vmatprep.mubr.f32.mxu1 %v1388_v1  ;;  %1051 = vmatpush1.msra.mxu1 %v1048_v30 }
 0x3b3   :  { %1052 = vmatprep.subr.mxu1 %v1047_v32 }
 0x3b4   :  { %1053 = vmatpush1.msra.mxu1 %v1046_v34 }
 0x3b5   :  { %1054 = vmatprep.subr.mxu1 %v1045_v36 }
 0x3b6   :  { %1055 = vmatpush1.msra.mxu1 %v1044_v38 }
 0x3b7   :  { %1056 = vmatprep.subr.mxu1 %v1043_v40 }
 0x3b8   :  { %1057 = vmatpush1.msra.mxu1 %v1042_v42 }
 0x471   :  { %v872_v19 = vpop.f32.mrf.mxu1 }
 0x472   :  { %v1804_v21 = vadd.f32 %v872_v19, %v1678_v25  ;;  %v1019_v25 = vld [vmem:[#allocation5 + $0x8] sm:$0xff] }
 0x473   :  { %v874_v23 = vpop.f32.mrf.mxu1 }
 0x474   :  { %v878_v26 = vadd.f32 %v874_v23, %v1683_v29  ;;  %879 = vmax.xlane.f32.xlu1 %v1804_v21 }
 0x476   :  { %993 = vmatmul.mubr.f32.vlgmr.msra.gmra.mxu0 %v878_v26 }
 0x477   :  { %1236 = vmatprep.mubr.f32.mxu0 %v1388_v1  ;;  %1173 = vmatpush1.msra.mxu0 %v1048_v30  ;;  %v1041_v1 = vld [vmem:[#allocation5 + $0xb8] sm:$0xff] }
 0x478   :  { %1174 = vmatprep.subr.mxu0 %v1047_v32  ;;  %1058 = vmatprep.subr.mxu1 %v1041_v1 }
 0x479   :  { %1175 = vmatpush1.msra.mxu0 %v1046_v34  ;;  %1059 = vmatpush1.msra.mxu1 %v1040_v44 }
 0x47a   :  { %1176 = vmatprep.subr.mxu0 %v1045_v36  ;;  %1060 = vmatprep.subr.mxu1 %v1039_v46 }
 0x47b   :  { %1177 = vmatpush1.msra.mxu0 %v1044_v38  ;;  %1061 = vmatpush1.msra.mxu1 %v1038_v48 }
 0x47c   :  { %1178 = vmatprep.subr.mxu0 %v1043_v40  ;;  %1062 = vmatprep.subr.mxu1 %v1037_v50 }
 0x47d   :  { %1179 = vmatpush1.msra.mxu0 %v1042_v42  ;;  %1063 = vmatpush1.msra.mxu1 %v1036_v52 }
 0x47e   :  { %1180 = vmatprep.subr.mxu0 %v1041_v1  ;;  %1064 = vmatprep.subr.mxu1 %v1035_v54 }
 0x47f   :  { %1181 = vmatpush1.msra.mxu0 %v1040_v44  ;;  %1065 = vmatpush1.msra.mxu1 %v1034_v56 }
 0x480   :  { %1182 = vmatprep.subr.mxu0 %v1039_v46  ;;  %1066 = vmatprep.subr.mxu1 %v1033_v58  ;;  %v515_v46 = vsub.f32 %v1725_v6, %v514_v59 }
 0x481   :  { %1183 = vmatpush1.msra.mxu0 %v1038_v48  ;;  %1067 = vmatpush1.msra.mxu1 %v1032_v60  ;;  %v758_v48 = vpop.xlane.xlu0 %757 }
 0x482   :  { %1184 = vmatprep.subr.mxu0 %v1037_v50  ;;  %1068 = vmatprep.subr.mxu1 %v1031_v62  ;;  %v516_v50 = vmul.f32 1.442695, %v515_v46 }
 0x483   :  { %1185 = vmatpush1.msra.mxu0 %v1036_v52  ;;  %1069 = vmatpush1.msra.mxu1 %v1030_v0  ;;  %v759_v52 = vsub.f32 %v1798_v11, %v758_v48 }
 0x484   :  { %1186 = vmatprep.subr.mxu0 %v1035_v54  ;;  %1070 = vmatprep.subr.mxu1 %v1029_v3 }
 0x485   :  { %1187 = vmatpush1.msra.mxu0 %v1034_v56  ;;  %1071 = vmatpush1.msra.mxu1 %v1028_v5  ;;  %v760_v56 = vmul.f32 1.442695, %v759_v52 }
 0x486   :  { %1188 = vmatprep.subr.mxu0 %v1033_v58  ;;  %1072 = vmatprep.subr.mxu1 %v1027_v8 }
 0x487   :  { %1189 = vmatpush1.msra.mxu0 %v1032_v60  ;;  %1073 = vmatpush1.msra.mxu1 %v1026_v12 }
 0x488   :  { %1190 = vmatprep.subr.mxu0 %v1031_v62  ;;  %1074 = vmatprep.subr.mxu1 %v1025_v10 }
 0x489   :  { %1191 = vmatpush1.msra.mxu0 %v1030_v0  ;;  %1075 = vmatpush1.msra.mxu1 %v1024_v16  ;;  %v263_v0 = vadd.f32 %v1721_v55, %v1648_v47 }
 0x48a   :  { %1192 = vmatprep.subr.mxu0 %v1029_v3  ;;  %1076 = vmatprep.subr.mxu1 %v1023_v18 }
 0x48b   :  { %1193 = vmatpush1.msra.mxu0 %v1028_v5  ;;  %1077 = vmatpush1.msra.mxu1 %v1022_v20 }
 0x48c   :  { %1194 = vmatprep.subr.mxu0 %v1027_v8  ;;  %1078 = vmatprep.subr.mxu1 %v1021_v22 }
 0x48d   :  { %1195 = vmatpush1.msra.mxu0 %v1026_v12  ;;  %1079 = vmatpush1.msra.mxu1 %v1020_v24 }
 0x48e   :  { %1196 = vmatprep.subr.mxu0 %v1025_v10  ;;  %1080 = vmatprep.subr.mxu1 %v1019_v25 }
 0x48f   :  { %1197 = vmatpush1.msra.mxu0 %v1024_v16  ;;  %1081 = vmatpush1.msra.mxu1 %v1018_v27 }
 0x490   :  { %1198 = vmatprep.subr.mxu0 %v1023_v18 }
 0x491   :  { %1199 = vmatpush1.msra.mxu0 %v1022_v20 }
 0x492   :  { %1200 = vmatprep.subr.mxu0 %v1021_v22 }
 0x493   :  { %1201 = vmatpush1.msra.mxu0 %v1020_v24 }
 0x494   :  { %1202 = vmatprep.subr.mxu0 %v1019_v25 }
 0x495   :  { %1203 = vmatpush1.msra.mxu0 %v1018_v27 }
 0x4fd   :  { %v880_v17 = vpop.xlane.xlu1 %879 }
 0x4fe   :  { %v881_v63 = vsub.f32 %v1804_v21, %v880_v17 }
 0x536   :  { %v994_v29 = vpop.f32.mrf.mxu0 }
 0x537   :  { %v999_v31 = vadd.f32 %v994_v29, %v1688_v33  ;;  %v882_v33 = vmul.f32 1.442695, %v881_v63 }
 0x538   :  { %v996_v35 = vpop.f32.mrf.mxu0 }
 0x539   :  { %v1000_v39 = vadd.f32 %v996_v35, %v1693_v37  ;;  %1001 = vmax.xlane.f32.xlu0 %v999_v31  ;;  %1311 = vpow2.f32 %v882_v33 }
 0x53b   :  { %1115 = vmatmul.mubr.f32.vlgmr.msra.gmra.mxu1 %v1000_v39 }
 0x546   :  { %v1312_v45 = vpop.eup %1311 }
 0x5c2   :  { %v1002_v54 = vpop.xlane.xlu0 %1001 }
 0x5c3   :  { %v1003_v58 = vsub.f32 %v999_v31, %v1002_v54 }
 0x5c5   :  { %v1004_v60 = vmul.f32 1.442695, %v1003_v58 }
 0x5fb   :  { %v1116_v4 = vpop.f32.mrf.mxu1 }
 0x5fc   :  { %v1121_v37 = vadd.f32 %v1116_v4, %v1698_v41 }
 0x5fd   :  { %v1118_v9 = vpop.f32.mrf.mxu1 }
 0x5fe   :  { %v1122_v13 = vadd.f32 %v1118_v9, %v1703_v49  ;;  %1123 = vmax.xlane.f32.xlu1 %v1121_v37 }
 0x600   :  { %1237 = vmatmul.mubr.f32.vlgmr.msra.gmra.mxu0 %v1122_v13 }
 0x602   :  { %397 = vadd.xlane.f32.xlu1 %v1308_v57 }
 0x606   :  { %640 = vadd.xlane.f32.xlu1 %v1310_v15 }
 0x60a   :  { %884 = vadd.xlane.f32.xlu1 %v1312_v45 }
 0x687   :  { %v1124_v19 = vpop.xlane.xlu1 %1123 }
 0x688   :  { %v1125_v23 = vsub.f32 %v1121_v37, %v1124_v19 }
 0x68a   :  { %v1126_v21 = vmul.f32 1.442695, %v1125_v23 }
 0x68b   :  { %v398_v26 = vpop.xlane.xlu1 %397 }
 0x68c   :  { %1313 = vpow2.f32 %v1126_v21 }
 0x68d   :  { %1315 = vlog2.f32 %v398_v26 }
 0x68f   :  { %v641_v28 = vpop.xlane.xlu1 %640 }
 0x690   :  { %1317 = vlog2.f32 %v641_v28 }
 0x693   :  { %v885_v41 = vpop.xlane.xlu1 %884 }
 0x694   :  { %1319 = vlog2.f32 %v885_v41 }
 0x695   :  { %1321 = vpow2.f32 %v516_v50 }
 0x696   :  { %1323 = vpow2.f32 %v760_v56 }
 0x697   :  { %1325 = vpow2.f32 %v1004_v60 }
 0x699   :  { %v1314_v30 = vpop.eup %1313 }
 0x69a   :  { %v1316_v49 = vpop.eup %1315  ;;  %1128 = vadd.xlane.f32.xlu1 %v1314_v30 }
 0x69b   :  { %v400_v32 = vmul.f32 0.6931472, %v1316_v49 }
 0x69d   :  { %v1318_v34 = vpop.eup %1317  ;;  %v401_v36 = vsub.f32 %v394_v51, %v400_v32 }
 0x69e   :  { %v643_v38 = vmul.f32 0.6931472, %v1318_v34 }
 0x69f   :  { %402 = vst [vmem:[%s1853_s5] sm:$0xff] %v401_v36 }
 0x6a0   :  { %v644_v40 = vsub.f32 %v637_v14, %v643_v38 }
 0x6a1   :  { %v1320_v42 = vpop.eup %1319 }
 0x6a2   :  { %1292 = vst [vmem:[%s1853_s5 + $0x10] sm:$0xff] %v644_v40  ;;  %v887_v1 = vmul.f32 0.6931472, %v1320_v42  ;;  %v1322_v6 = vpop.eup %1321 }
 0x6a3   :  { %v1324_v11 = vpop.eup %1323 }
 0x6a4   :  { %v888_v44 = vsub.f32 %v881_v63, %v887_v1  ;;  %v1326_v12 = vpop.eup %1325 }
 0x6a6   :  { %1294 = vst [vmem:[%s1853_s5 + $0x20] sm:$0xff] %v888_v44 }
 0x6c0   :  { %v1238_v62 = vpop.f32.mrf.mxu0 }
 0x6c1   :  { %v1243_v3 = vadd.f32 %v1238_v62, %v1716_v53 }
 0x6c2   :  { %v1240_v5 = vpop.f32.mrf.mxu0 }
 0x6c3   :  { %v1244_v8 = vadd.f32 %v1240_v5, %v263_v0  ;;  %1245 = vmax.xlane.f32.xlu0 %v1243_v3 }
 0x6c5   :  { %1257 = vst [vmem:[%s1854_s6] sm:$0xff] %v1244_v8 }
 0x6c7   :  { %518 = vadd.xlane.f32.xlu0 %v1322_v6 }
 0x6cb   :  { %762 = vadd.xlane.f32.xlu0 %v1324_v11 }
 0x6cf   :  { %1006 = vadd.xlane.f32.xlu0 %v1326_v12 }
 0x723   :  { %v1129_v10 = vpop.xlane.xlu1 %1128 }
 0x724   :  { %1327 = vlog2.f32 %v1129_v10 }
 0x731   :  { %v1328_v16 = vpop.eup %1327 }
 0x732   :  { %v1131_v47 = vmul.f32 0.6931472, %v1328_v16 }
 0x734   :  { %v1132_v55 = vsub.f32 %v1125_v23, %v1131_v47 }
 0x736   :  { %1296 = vst [vmem:[%s1853_s5 + $0x30] sm:$0xff] %v1132_v55 }
 0x74c   :  { %v1246_v53 = vpop.xlane.xlu0 %1245 }
 0x74d   :  { %v1247_v18 = vsub.f32 %v1243_v3, %v1246_v53 }
 0x74f   :  { %v1248_v20 = vmul.f32 1.442695, %v1247_v18 }
 0x750   :  { %v519_v22 = vpop.xlane.xlu0 %518 }
 0x751   :  { %1329 = vpow2.f32 %v1248_v20 }
 0x752   :  { %1331 = vlog2.f32 %v519_v22 }
 0x754   :  { %v763_v24 = vpop.xlane.xlu0 %762 }
 0x755   :  { %1333 = vlog2.f32 %v763_v24 }
 0x758   :  { %v1007_v25 = vpop.xlane.xlu0 %1006 }
 0x759   :  { %1335 = vlog2.f32 %v1007_v25 }
 0x75e   :  { %v1330_v27 = vpop.eup %1329 }
 0x75f   :  { %v1332_v29 = vpop.eup %1331  ;;  %1250 = vadd.xlane.f32.xlu0 %v1330_v27 }
 0x760   :  { %v521_v31 = vmul.f32 0.6931472, %v1332_v29 }
 0x762   :  { %v1334_v35 = vpop.eup %1333  ;;  %v522_v39 = vsub.f32 %v515_v46, %v521_v31 }
 0x763   :  { %v765_v43 = vmul.f32 0.6931472, %v1334_v35 }
 0x764   :  { %1291 = vst [vmem:[%s1853_s5 + $0x8] sm:$0xff] %v522_v39 }
 0x765   :  { %v766_v51 = vsub.f32 %v759_v52, %v765_v43 }
 0x766   :  { %v1336_v59 = vpop.eup %1335 }
 0x767   :  { %1293 = vst [vmem:[%s1853_s5 + $0x18] sm:$0xff] %v766_v51  ;;  %v1009_v61 = vmul.f32 0.6931472, %v1336_v59 }
 0x769   :  { %v1010_v2 = vsub.f32 %v1003_v58, %v1009_v61 }
 0x76b   :  { %1295 = vst [vmem:[%s1853_s5 + $0x28] sm:$0xff] %v1010_v2 }
 0x7e8   :  { %v1251_v14 = vpop.xlane.xlu0 %1250 }
 0x7e9   :  { %1337 = vlog2.f32 %v1251_v14 }
 0x7f6   :  { %v1338_v17 = vpop.eup %1337 }
 0x7f7   :  { %v1253_v7 = vmul.f32 0.6931472, %v1338_v17 }
 0x7f9   :  { %v1254_v63 = vsub.f32 %v1247_v18, %v1253_v7 }
 0x7fb   :  { %1297 = vst [vmem:[%s1853_s5 + $0x38] sm:$0xff] %v1254_v63 }
 0x7fc   :  { %1266 = vsyncpa [#allocation4], 1 }
 0x7fd   :  { %1267 = vsyncpa [#allocation6], 1 }

</bundles_post_ra>
